<compile_context>
chip_gen: v5e
topology: v5e:2x2
jax: 0.10.0
libtpu: 0.0.40
codegen_flags: <defaults>
</compile_context>

<pallas_src>
import math
import functools
import numpy as np
import jax
import jax.numpy as jnp
from jax.experimental import pallas as pl
from jax.experimental.pallas import tpu as pltpu


def ins_fins_for(n):
    """Pure-python port of LogConv.ins_fins_for."""
    ins = [0, 0]
    fins = [3, 6]
    for i in range(2, int(math.log2(n)) + 1):
        iin = 2 ** i - 2 ** (i - 2)
        l = 2 ** (i + 1) + 2 ** (i - 2)
        ins.append(iin)
        fins.append(min(iin + l, n))
    return ins, fins


def _logconv_kernel(x_ref, m_ref, w_ref, b_ref, o_ref, pm_ref, *,
                    K, pad, W, HW, n_oct, C_pad, HALO):
    """One batch element per grid step.

    x_ref : [C_pad, HALO + HW + HALO]  channel-major x, flat (h,w) on lanes, zero halo
    m_ref : [K*K*n_oct, HW]            static 0/1 masks (band membership + edge taps)
    w_ref : [C_out, K*K*n_oct*C_pad]   weight-normed weights, x0.5 merge factor folded in
    b_ref : [C_out, HW]                per-row merged bias (x0.5 folded in)
    o_ref : [C_out, HW]                output block (lane-dense: HW = H_out*W)
    pm_ref: [K*K*n_oct*C_pad, HW]      VMEM scratch: masked im2col patch (the contraction)
    """
    x = x_ref[...]
    m = m_ref[...]
    # Build the masked im2col patch.  Each 3x3 tap is one static lane slice of the
    # halo-padded flat x, reused across all octaves.
    # TODO(synk): pltpu.roll on the lane axis could keep these shifts on the otherwise
    # idle XLU instead of slice relayouts; slices are kept for guaranteed semantics.
    for kh in range(K):
        for kw in range(K):
            s = (kh - pad) * W + (kw - pad)
            xs = x[:, HALO + s:HALO + s + HW]                     # [C_pad, HW]
            t = kh * K + kw
            for o in range(n_oct):
                r = t * n_oct + o
                mrow = m[r:r + 1, :]                              # [1, HW] sublane bcast
                pm_ref[pl.ds(r * C_pad, C_pad), :] = mrow * xs
    # Single big-contraction MXU matmul (taps x octaves x c_in = 360 deep), then bias.
    acc = jnp.dot(w_ref[...], pm_ref[...], preferred_element_type=jnp.float32)
    o_ref[...] = acc + b_ref[...]


def log_conv_forward(x_nchw, w_v, g, bias, *, log_size, kernel_size, stride, padding):
    """Pallas forward. x_nchw: [B, C_in, H, W]; w_v: [n_oct, C_out, C_in, K, K];
    g, bias: [n_oct, C_out]. Returns NCHW [B, C_out, max(fins), W]."""
    assert stride == 1 and kernel_size % 2 == 1 and padding == kernel_size // 2, \
        "only the 'same' conv configuration (stride=1, padding=k//2) is supported"
    # TODO(synk): non-unit stride changes per-octave output sizes (and breaks the original
    # module's merge_sigs as well); only the shape-consistent case is implemented.

    ins, fins = ins_fins_for(log_size)
    n_oct = len(ins)
    B, C_in, H, W = x_nchw.shape
    C_out = w_v.shape[1]
    K = kernel_size
    pad = padding
    H_out = max(fins)
    assert H >= H_out
    HW = H_out * W
    C_pad = ((C_in + 7) // 8) * 8          # pad channels to a full sublane tile
    HALO = pad * W + pad                   # flat halo so every tap slice stays in range

    # ---- static masks (numpy -> compile-time constants) ------------------------------
    # mask[(kh,kw,o), (h,w)] = 1 iff output row h is in band o, the tap's source row
    # h+kh-pad is also in band o (per-band zero padding along H), and the source column
    # is inside the image (per-band zero padding along W).
    h_idx = np.arange(H_out)
    w_idx = np.arange(W)
    mask_np = np.zeros((K * K * n_oct, HW), np.float32)
    inband_np = np.zeros((n_oct, HW), np.float32)
    for o, (i0, i1) in enumerate(zip(ins, fins)):
        hin = (h_idx >= i0) & (h_idx < i1)
        inband_np[o] = np.repeat(hin.astype(np.float32), W)
        for kh in range(K):
            for kw in range(K):
                hs = h_idx + (kh - pad)
                ws = w_idx + (kw - pad)
                ok_h = hin & (hs >= i0) & (hs < i1)
                ok_w = (ws >= 0) & (ws < W)
                mask_np[(kh * K + kw) * n_oct + o] = (
                    (ok_h[:, None] & ok_w[None, :]).reshape(-1).astype(np.float32))

    # ---- weights: weight_norm (dim=0) with the merge /2 folded in ---------------------
    w32 = w_v.astype(jnp.float32)
    norm = jnp.sqrt(jnp.sum(w32 ** 2, axis=(2, 3, 4), keepdims=True))
    w_eff = 0.5 * g.astype(jnp.float32)[:, :, None, None, None] * w32 / norm
    w_eff = jnp.pad(w_eff, ((0, 0), (0, 0), (0, C_pad - C_in), (0, 0), (0, 0)))
    # [n_oct, C_out, C_pad, K, K] -> [C_out, (kh, kw, o, ci)] to match the kernel's order.
    w_all = jnp.transpose(w_eff, (1, 3, 4, 0, 2)).reshape(C_out, K * K * n_oct * C_pad)

    # ---- bias plane: sum of biases of octaves covering each row, /2 folded in ---------
    b_plane = 0.5 * jnp.einsum('oc,on->cn', bias.astype(jnp.float32),
                               jnp.asarray(inband_np))            # [C_out, HW]

    # ---- x: NCHW -> [B, C_pad, HALO + HW + HALO] (channel-major, flat (h,w) on lanes) --
    x3 = x_nchw[:, :, :H_out, :].astype(jnp.float32).reshape(B, C_in, HW)
    x3 = jnp.pad(x3, ((0, 0), (0, C_pad - C_in), (HALO, HALO)))

    kernel = functools.partial(_logconv_kernel, K=K, pad=pad, W=W, HW=HW,
                               n_oct=n_oct, C_pad=C_pad, HALO=HALO)

    out = pl.pallas_call(
        kernel,
        out_shape=jax.ShapeDtypeStruct((B, C_out, HW), jnp.float32),
        grid=(B,),
        in_specs=[
            pl.BlockSpec((None, C_pad, HW + 2 * HALO), lambda b: (b, 0, 0)),
            pl.BlockSpec((K * K * n_oct, HW), lambda b: (0, 0)),
            pl.BlockSpec((C_out, K * K * n_oct * C_pad), lambda b: (0, 0)),
            pl.BlockSpec((C_out, HW), lambda b: (0, 0)),
        ],
        out_specs=pl.BlockSpec((None, C_out, HW), lambda b: (b, 0, 0)),
        scratch_shapes=[pltpu.VMEM((K * K * n_oct * C_pad, HW), jnp.float32)],
        compiler_params=pltpu.CompilerParams(dimension_semantics=("parallel",)),
    )(x3, jnp.asarray(mask_np), w_all, b_plane)

    return out.reshape(B, C_out, H_out, W)   # NCHW, no transpose needed


def log_conv_reference(x_nchw, w_v, g, bias, *, log_size, kernel_size, stride, padding):
    """Pure-JAX reference mirroring the PyTorch module."""
    ins, fins = ins_fins_for(log_size)
    norm = jnp.sqrt(jnp.sum(w_v ** 2, axis=(2, 3, 4), keepdims=True))
    w_eff = g[:, :, None, None, None] * w_v / norm
    B, C_in, H, W = x_nchw.shape
    C_out = w_v.shape[1]
    results = []
    for o, (i0, i1) in enumerate(zip(ins, fins)):
        band = x_nchw[:, :, i0:i1, :]
        r = jax.lax.conv_general_dilated(
            band, w_eff[o], window_strides=(stride, stride),
            padding=[(padding, padding), (padding, padding)],
            dimension_numbers=('NCHW', 'OIHW', 'NCHW'))
        results.append(r + bias[o][None, :, None, None])
    m = jnp.zeros((B, C_out, max(fins), W), jnp.float32)
    for r, i0, i1 in zip(results, ins, fins):
        m = m.at[:, :, i0:i1, :].add(r)
    return m / 2


if __name__ == "__main__":
    log_size = 16
    in_channels = 4
    out_channels = 8
    kernel_size = 3
    stride = 1
    padding = 1
    B, H, W = 2, 16, 16

    ins, fins = ins_fins_for(log_size)
    n_oct = len(ins)   # 5 octaves for log_size=16

    key = jax.random.PRNGKey(0)
    kx, kw, kg, kb = jax.random.split(key, 4)
    x = jax.random.normal(kx, (B, in_channels, H, W), jnp.float32)
    w_v = 0.1 * jax.random.normal(
        kw, (n_oct, out_channels, in_channels, kernel_size, kernel_size), jnp.float32)
    g = jax.random.uniform(kg, (n_oct, out_channels), jnp.float32, 0.5, 1.5)
    bias = jax.random.uniform(kb, (n_oct, out_channels), jnp.float32, -0.1, 0.1)

    out = log_conv_forward(x, w_v, g, bias, log_size=log_size,
                           kernel_size=kernel_size, stride=stride, padding=padding)
    out = jax.block_until_ready(out)

    ref = log_conv_reference(x, w_v, g, bias, log_size=log_size,
                             kernel_size=kernel_size, stride=stride, padding=padding)
    np.testing.assert_allclose(np.asarray(out), np.asarray(ref), rtol=1e-4, atol=1e-4)
    print("KERNEL_OK")
</pallas_src>

<mosaic_0001>
module attributes {stable_mosaic.version = 11 : i64} {
  func.func @_logconv_kernel(%arg0: i32, %arg1: memref<1x8x290xf32, #tpu.memory_space<vmem>>, %arg2: memref<45x256xf32, #tpu.memory_space<vmem>>, %arg3: memref<8x360xf32, #tpu.memory_space<vmem>>, %arg4: memref<8x256xf32, #tpu.memory_space<vmem>>, %arg5: memref<1x8x256xf32, #tpu.memory_space<vmem>>, %arg6: memref<360x256xf32, #tpu.memory_space<vmem>>) attributes {dimension_semantics = [#tpu.dimension_semantics<parallel>], iteration_bounds = array<i64: 2>, scalar_prefetch = 0 : i64, scratch_operands = 1 : i64, tpu.core_type = #tpu.core_type<tc>, window_params = [{transform_indices = @transform_0, window_bounds = array<i64: 1, 8, 290>}, {pipeline_mode = #tpu.pipeline_mode<synchronous>, transform_indices = @transform_1, window_bounds = array<i64: 45, 256>}, {pipeline_mode = #tpu.pipeline_mode<synchronous>, transform_indices = @transform_2, window_bounds = array<i64: 8, 360>}, {pipeline_mode = #tpu.pipeline_mode<synchronous>, transform_indices = @transform_3, window_bounds = array<i64: 8, 256>}, {transform_indices = @transform_4, window_bounds = array<i64: 1, 8, 256>}]} {
    %c0 = arith.constant 0 : index
    %c0_0 = arith.constant 0 : index
    %c0_1 = arith.constant 0 : index
    %0 = vector.load %arg1[%c0, %c0_0, %c0_1] : memref<1x8x290xf32, #tpu.memory_space<vmem>>, vector<1x8x290xf32>
    %1 = vector.shape_cast %0 : vector<1x8x290xf32> to vector<8x290xf32>
    %c0_2 = arith.constant 0 : index
    %c0_3 = arith.constant 0 : index
    %2 = vector.load %arg2[%c0_2, %c0_3] : memref<45x256xf32, #tpu.memory_space<vmem>>, vector<45x256xf32>
    %3 = vector.extract_strided_slice %1 {offsets = [0, 0], sizes = [8, 256], strides = [1, 1]} : vector<8x290xf32> to vector<8x256xf32>
    %4 = vector.extract_strided_slice %2 {offsets = [0, 0], sizes = [1, 256], strides = [1, 1]} : vector<45x256xf32> to vector<1x256xf32>
    %5 = vector.broadcast %4 : vector<1x256xf32> to vector<8x256xf32>
    %6 = arith.mulf %5, %3 : vector<8x256xf32>
    %c0_4 = arith.constant 0 : index
    %c0_5 = arith.constant 0 : index
    %7 = vector.load %arg6[%c0_4, %c0_5] : memref<360x256xf32, #tpu.memory_space<vmem>>, vector<8x256xf32>
    tpu.vector_store %arg6[%c0_4, %c0_5], %6 {strides = array<i32>} : memref<360x256xf32, #tpu.memory_space<vmem>>, vector<8x256xf32>,
    %8 = vector.extract_strided_slice %2 {offsets = [1, 0], sizes = [1, 256], strides = [1, 1]} : vector<45x256xf32> to vector<1x256xf32>
    %9 = vector.broadcast %8 : vector<1x256xf32> to vector<8x256xf32>
    %10 = arith.mulf %9, %3 : vector<8x256xf32>
    %c8 = arith.constant 8 : index
    %c0_6 = arith.constant 0 : index
    %11 = vector.load %arg6[%c8, %c0_6] : memref<360x256xf32, #tpu.memory_space<vmem>>, vector<8x256xf32>
    tpu.vector_store %arg6[%c8, %c0_6], %10 {strides = array<i32>} : memref<360x256xf32, #tpu.memory_space<vmem>>, vector<8x256xf32>,
    %12 = vector.extract_strided_slice %2 {offsets = [2, 0], sizes = [1, 256], strides = [1, 1]} : vector<45x256xf32> to vector<1x256xf32>
    %13 = vector.broadcast %12 : vector<1x256xf32> to vector<8x256xf32>
    %14 = arith.mulf %13, %3 : vector<8x256xf32>
    %c16 = arith.constant 16 : index
    %c0_7 = arith.constant 0 : index
    %15 = vector.load %arg6[%c16, %c0_7] : memref<360x256xf32, #tpu.memory_space<vmem>>, vector<8x256xf32>
    tpu.vector_store %arg6[%c16, %c0_7], %14 {strides = array<i32>} : memref<360x256xf32, #tpu.memory_space<vmem>>, vector<8x256xf32>,
    %16 = vector.extract_strided_slice %2 {offsets = [3, 0], sizes = [1, 256], strides = [1, 1]} : vector<45x256xf32> to vector<1x256xf32>
    %17 = vector.broadcast %16 : vector<1x256xf32> to vector<8x256xf32>
    %18 = arith.mulf %17, %3 : vector<8x256xf32>
    %c24 = arith.constant 24 : index
    %c0_8 = arith.constant 0 : index
    %19 = vector.load %arg6[%c24, %c0_8] : memref<360x256xf32, #tpu.memory_space<vmem>>, vector<8x256xf32>
    tpu.vector_store %arg6[%c24, %c0_8], %18 {strides = array<i32>} : memref<360x256xf32, #tpu.memory_space<vmem>>, vector<8x256xf32>,
    %20 = vector.extract_strided_slice %2 {offsets = [4, 0], sizes = [1, 256], strides = [1, 1]} : vector<45x256xf32> to vector<1x256xf32>
    %21 = vector.broadcast %20 : vector<1x256xf32> to vector<8x256xf32>
    %22 = arith.mulf %21, %3 : vector<8x256xf32>
    %c32 = arith.constant 32 : index
    %c0_9 = arith.constant 0 : index
    %23 = vector.load %arg6[%c32, %c0_9] : memref<360x256xf32, #tpu.memory_space<vmem>>, vector<8x256xf32>
    tpu.vector_store %arg6[%c32, %c0_9], %22 {strides = array<i32>} : memref<360x256xf32, #tpu.memory_space<vmem>>, vector<8x256xf32>,
    %24 = vector.extract_strided_slice %1 {offsets = [0, 1], sizes = [8, 256], strides = [1, 1]} : vector<8x290xf32> to vector<8x256xf32>
    %25 = vector.extract_strided_slice %2 {offsets = [5, 0], sizes = [1, 256], strides = [1, 1]} : vector<45x256xf32> to vector<1x256xf32>
    %26 = vector.broadcast %25 : vector<1x256xf32> to vector<8x256xf32>
    %27 = arith.mulf %26, %24 : vector<8x256xf32>
    %c40 = arith.constant 40 : index
    %c0_10 = arith.constant 0 : index
    %28 = vector.load %arg6[%c40, %c0_10] : memref<360x256xf32, #tpu.memory_space<vmem>>, vector<8x256xf32>
    tpu.vector_store %arg6[%c40, %c0_10], %27 {strides = array<i32>} : memref<360x256xf32, #tpu.memory_space<vmem>>, vector<8x256xf32>,
    %29 = vector.extract_strided_slice %2 {offsets = [6, 0], sizes = [1, 256], strides = [1, 1]} : vector<45x256xf32> to vector<1x256xf32>
    %30 = vector.broadcast %29 : vector<1x256xf32> to vector<8x256xf32>
    %31 = arith.mulf %30, %24 : vector<8x256xf32>
    %c48 = arith.constant 48 : index
    %c0_11 = arith.constant 0 : index
    %32 = vector.load %arg6[%c48, %c0_11] : memref<360x256xf32, #tpu.memory_space<vmem>>, vector<8x256xf32>
    tpu.vector_store %arg6[%c48, %c0_11], %31 {strides = array<i32>} : memref<360x256xf32, #tpu.memory_space<vmem>>, vector<8x256xf32>,
    %33 = vector.extract_strided_slice %2 {offsets = [7, 0], sizes = [1, 256], strides = [1, 1]} : vector<45x256xf32> to vector<1x256xf32>
    %34 = vector.broadcast %33 : vector<1x256xf32> to vector<8x256xf32>
    %35 = arith.mulf %34, %24 : vector<8x256xf32>
    %c56 = arith.constant 56 : index
    %c0_12 = arith.constant 0 : index
    %36 = vector.load %arg6[%c56, %c0_12] : memref<360x256xf32, #tpu.memory_space<vmem>>, vector<8x256xf32>
    tpu.vector_store %arg6[%c56, %c0_12], %35 {strides = array<i32>} : memref<360x256xf32, #tpu.memory_space<vmem>>, vector<8x256xf32>,
    %37 = vector.extract_strided_slice %2 {offsets = [8, 0], sizes = [1, 256], strides = [1, 1]} : vector<45x256xf32> to vector<1x256xf32>
    %38 = vector.broadcast %37 : vector<1x256xf32> to vector<8x256xf32>
    %39 = arith.mulf %38, %24 : vector<8x256xf32>
    %c64 = arith.constant 64 : index
    %c0_13 = arith.constant 0 : index
    %40 = vector.load %arg6[%c64, %c0_13] : memref<360x256xf32, #tpu.memory_space<vmem>>, vector<8x256xf32>
    tpu.vector_store %arg6[%c64, %c0_13], %39 {strides = array<i32>} : memref<360x256xf32, #tpu.memory_space<vmem>>, vector<8x256xf32>,
    %41 = vector.extract_strided_slice %2 {offsets = [9, 0], sizes = [1, 256], strides = [1, 1]} : vector<45x256xf32> to vector<1x256xf32>
    %42 = vector.broadcast %41 : vector<1x256xf32> to vector<8x256xf32>
    %43 = arith.mulf %42, %24 : vector<8x256xf32>
    %c72 = arith.constant 72 : index
    %c0_14 = arith.constant 0 : index
    %44 = vector.load %arg6[%c72, %c0_14] : memref<360x256xf32, #tpu.memory_space<vmem>>, vector<8x256xf32>
    tpu.vector_store %arg6[%c72, %c0_14], %43 {strides = array<i32>} : memref<360x256xf32, #tpu.memory_space<vmem>>, vector<8x256xf32>,
    %45 = vector.extract_strided_slice %1 {offsets = [0, 2], sizes = [8, 256], strides = [1, 1]} : vector<8x290xf32> to vector<8x256xf32>
    %46 = vector.extract_strided_slice %2 {offsets = [10, 0], sizes = [1, 256], strides = [1, 1]} : vector<45x256xf32> to vector<1x256xf32>
    %47 = vector.broadcast %46 : vector<1x256xf32> to vector<8x256xf32>
    %48 = arith.mulf %47, %45 : vector<8x256xf32>
    %c80 = arith.constant 80 : index
    %c0_15 = arith.constant 0 : index
    %49 = vector.load %arg6[%c80, %c0_15] : memref<360x256xf32, #tpu.memory_space<vmem>>, vector<8x256xf32>
    tpu.vector_store %arg6[%c80, %c0_15], %48 {strides = array<i32>} : memref<360x256xf32, #tpu.memory_space<vmem>>, vector<8x256xf32>,
    %50 = vector.extract_strided_slice %2 {offsets = [11, 0], sizes = [1, 256], strides = [1, 1]} : vector<45x256xf32> to vector<1x256xf32>
    %51 = vector.broadcast %50 : vector<1x256xf32> to vector<8x256xf32>
    %52 = arith.mulf %51, %45 : vector<8x256xf32>
    %c88 = arith.constant 88 : index
    %c0_16 = arith.constant 0 : index
    %53 = vector.load %arg6[%c88, %c0_16] : memref<360x256xf32, #tpu.memory_space<vmem>>, vector<8x256xf32>
    tpu.vector_store %arg6[%c88, %c0_16], %52 {strides = array<i32>} : memref<360x256xf32, #tpu.memory_space<vmem>>, vector<8x256xf32>,
    %54 = vector.extract_strided_slice %2 {offsets = [12, 0], sizes = [1, 256], strides = [1, 1]} : vector<45x256xf32> to vector<1x256xf32>
    %55 = vector.broadcast %54 : vector<1x256xf32> to vector<8x256xf32>
    %56 = arith.mulf %55, %45 : vector<8x256xf32>
    %c96 = arith.constant 96 : index
    %c0_17 = arith.constant 0 : index
    %57 = vector.load %arg6[%c96, %c0_17] : memref<360x256xf32, #tpu.memory_space<vmem>>, vector<8x256xf32>
    tpu.vector_store %arg6[%c96, %c0_17], %56 {strides = array<i32>} : memref<360x256xf32, #tpu.memory_space<vmem>>, vector<8x256xf32>,
    %58 = vector.extract_strided_slice %2 {offsets = [13, 0], sizes = [1, 256], strides = [1, 1]} : vector<45x256xf32> to vector<1x256xf32>
    %59 = vector.broadcast %58 : vector<1x256xf32> to vector<8x256xf32>
    %60 = arith.mulf %59, %45 : vector<8x256xf32>
    %c104 = arith.constant 104 : index
    %c0_18 = arith.constant 0 : index
    %61 = vector.load %arg6[%c104, %c0_18] : memref<360x256xf32, #tpu.memory_space<vmem>>, vector<8x256xf32>
    tpu.vector_store %arg6[%c104, %c0_18], %60 {strides = array<i32>} : memref<360x256xf32, #tpu.memory_space<vmem>>, vector<8x256xf32>,
    %62 = vector.extract_strided_slice %2 {offsets = [14, 0], sizes = [1, 256], strides = [1, 1]} : vector<45x256xf32> to vector<1x256xf32>
    %63 = vector.broadcast %62 : vector<1x256xf32> to vector<8x256xf32>
    %64 = arith.mulf %63, %45 : vector<8x256xf32>
    %c112 = arith.constant 112 : index
    %c0_19 = arith.constant 0 : index
    %65 = vector.load %arg6[%c112, %c0_19] : memref<360x256xf32, #tpu.memory_space<vmem>>, vector<8x256xf32>
    tpu.vector_store %arg6[%c112, %c0_19], %64 {strides = array<i32>} : memref<360x256xf32, #tpu.memory_space<vmem>>, vector<8x256xf32>,
    %66 = vector.extract_strided_slice %1 {offsets = [0, 16], sizes = [8, 256], strides = [1, 1]} : vector<8x290xf32> to vector<8x256xf32>
    %67 = vector.extract_strided_slice %2 {offsets = [15, 0], sizes = [1, 256], strides = [1, 1]} : vector<45x256xf32> to vector<1x256xf32>
    %68 = vector.broadcast %67 : vector<1x256xf32> to vector<8x256xf32>
    %69 = arith.mulf %68, %66 : vector<8x256xf32>
    %c120 = arith.constant 120 : index
    %c0_20 = arith.constant 0 : index
    %70 = vector.load %arg6[%c120, %c0_20] : memref<360x256xf32, #tpu.memory_space<vmem>>, vector<8x256xf32>
    tpu.vector_store %arg6[%c120, %c0_20], %69 {strides = array<i32>} : memref<360x256xf32, #tpu.memory_space<vmem>>, vector<8x256xf32>,
    %71 = vector.extract_strided_slice %2 {offsets = [16, 0], sizes = [1, 256], strides = [1, 1]} : vector<45x256xf32> to vector<1x256xf32>
    %72 = vector.broadcast %71 : vector<1x256xf32> to vector<8x256xf32>
    %73 = arith.mulf %72, %66 : vector<8x256xf32>
    %c128 = arith.constant 128 : index
    %c0_21 = arith.constant 0 : index
    %74 = vector.load %arg6[%c128, %c0_21] : memref<360x256xf32, #tpu.memory_space<vmem>>, vector<8x256xf32>
    tpu.vector_store %arg6[%c128, %c0_21], %73 {strides = array<i32>} : memref<360x256xf32, #tpu.memory_space<vmem>>, vector<8x256xf32>,
    %75 = vector.extract_strided_slice %2 {offsets = [17, 0], sizes = [1, 256], strides = [1, 1]} : vector<45x256xf32> to vector<1x256xf32>
    %76 = vector.broadcast %75 : vector<1x256xf32> to vector<8x256xf32>
    %77 = arith.mulf %76, %66 : vector<8x256xf32>
    %c136 = arith.constant 136 : index
    %c0_22 = arith.constant 0 : index
    %78 = vector.load %arg6[%c136, %c0_22] : memref<360x256xf32, #tpu.memory_space<vmem>>, vector<8x256xf32>
    tpu.vector_store %arg6[%c136, %c0_22], %77 {strides = array<i32>} : memref<360x256xf32, #tpu.memory_space<vmem>>, vector<8x256xf32>,
    %79 = vector.extract_strided_slice %2 {offsets = [18, 0], sizes = [1, 256], strides = [1, 1]} : vector<45x256xf32> to vector<1x256xf32>
    %80 = vector.broadcast %79 : vector<1x256xf32> to vector<8x256xf32>
    %81 = arith.mulf %80, %66 : vector<8x256xf32>
    %c144 = arith.constant 144 : index
    %c0_23 = arith.constant 0 : index
    %82 = vector.load %arg6[%c144, %c0_23] : memref<360x256xf32, #tpu.memory_space<vmem>>, vector<8x256xf32>
    tpu.vector_store %arg6[%c144, %c0_23], %81 {strides = array<i32>} : memref<360x256xf32, #tpu.memory_space<vmem>>, vector<8x256xf32>,
    %83 = vector.extract_strided_slice %2 {offsets = [19, 0], sizes = [1, 256], strides = [1, 1]} : vector<45x256xf32> to vector<1x256xf32>
    %84 = vector.broadcast %83 : vector<1x256xf32> to vector<8x256xf32>
    %85 = arith.mulf %84, %66 : vector<8x256xf32>
    %c152 = arith.constant 152 : index
    %c0_24 = arith.constant 0 : index
    %86 = vector.load %arg6[%c152, %c0_24] : memref<360x256xf32, #tpu.memory_space<vmem>>, vector<8x256xf32>
    tpu.vector_store %arg6[%c152, %c0_24], %85 {strides = array<i32>} : memref<360x256xf32, #tpu.memory_space<vmem>>, vector<8x256xf32>,
    %87 = vector.extract_strided_slice %1 {offsets = [0, 17], sizes = [8, 256], strides = [1, 1]} : vector<8x290xf32> to vector<8x256xf32>
    %88 = vector.extract_strided_slice %2 {offsets = [20, 0], sizes = [1, 256], strides = [1, 1]} : vector<45x256xf32> to vector<1x256xf32>
    %89 = vector.broadcast %88 : vector<1x256xf32> to vector<8x256xf32>
    %90 = arith.mulf %89, %87 : vector<8x256xf32>
    %c160 = arith.constant 160 : index
    %c0_25 = arith.constant 0 : index
    %91 = vector.load %arg6[%c160, %c0_25] : memref<360x256xf32, #tpu.memory_space<vmem>>, vector<8x256xf32>
    tpu.vector_store %arg6[%c160, %c0_25], %90 {strides = array<i32>} : memref<360x256xf32, #tpu.memory_space<vmem>>, vector<8x256xf32>,
    %92 = vector.extract_strided_slice %2 {offsets = [21, 0], sizes = [1, 256], strides = [1, 1]} : vector<45x256xf32> to vector<1x256xf32>
    %93 = vector.broadcast %92 : vector<1x256xf32> to vector<8x256xf32>
    %94 = arith.mulf %93, %87 : vector<8x256xf32>
    %c168 = arith.constant 168 : index
    %c0_26 = arith.constant 0 : index
    %95 = vector.load %arg6[%c168, %c0_26] : memref<360x256xf32, #tpu.memory_space<vmem>>, vector<8x256xf32>
    tpu.vector_store %arg6[%c168, %c0_26], %94 {strides = array<i32>} : memref<360x256xf32, #tpu.memory_space<vmem>>, vector<8x256xf32>,
    %96 = vector.extract_strided_slice %2 {offsets = [22, 0], sizes = [1, 256], strides = [1, 1]} : vector<45x256xf32> to vector<1x256xf32>
    %97 = vector.broadcast %96 : vector<1x256xf32> to vector<8x256xf32>
    %98 = arith.mulf %97, %87 : vector<8x256xf32>
    %c176 = arith.constant 176 : index
    %c0_27 = arith.constant 0 : index
    %99 = vector.load %arg6[%c176, %c0_27] : memref<360x256xf32, #tpu.memory_space<vmem>>, vector<8x256xf32>
    tpu.vector_store %arg6[%c176, %c0_27], %98 {strides = array<i32>} : memref<360x256xf32, #tpu.memory_space<vmem>>, vector<8x256xf32>,
    %100 = vector.extract_strided_slice %2 {offsets = [23, 0], sizes = [1, 256], strides = [1, 1]} : vector<45x256xf32> to vector<1x256xf32>
    %101 = vector.broadcast %100 : vector<1x256xf32> to vector<8x256xf32>
    %102 = arith.mulf %101, %87 : vector<8x256xf32>
    %c184 = arith.constant 184 : index
    %c0_28 = arith.constant 0 : index
    %103 = vector.load %arg6[%c184, %c0_28] : memref<360x256xf32, #tpu.memory_space<vmem>>, vector<8x256xf32>
    tpu.vector_store %arg6[%c184, %c0_28], %102 {strides = array<i32>} : memref<360x256xf32, #tpu.memory_space<vmem>>, vector<8x256xf32>,
    %104 = vector.extract_strided_slice %2 {offsets = [24, 0], sizes = [1, 256], strides = [1, 1]} : vector<45x256xf32> to vector<1x256xf32>
    %105 = vector.broadcast %104 : vector<1x256xf32> to vector<8x256xf32>
    %106 = arith.mulf %105, %87 : vector<8x256xf32>
    %c192 = arith.constant 192 : index
    %c0_29 = arith.constant 0 : index
    %107 = vector.load %arg6[%c192, %c0_29] : memref<360x256xf32, #tpu.memory_space<vmem>>, vector<8x256xf32>
    tpu.vector_store %arg6[%c192, %c0_29], %106 {strides = array<i32>} : memref<360x256xf32, #tpu.memory_space<vmem>>, vector<8x256xf32>,
    %108 = vector.extract_strided_slice %1 {offsets = [0, 18], sizes = [8, 256], strides = [1, 1]} : vector<8x290xf32> to vector<8x256xf32>
    %109 = vector.extract_strided_slice %2 {offsets = [25, 0], sizes = [1, 256], strides = [1, 1]} : vector<45x256xf32> to vector<1x256xf32>
    %110 = vector.broadcast %109 : vector<1x256xf32> to vector<8x256xf32>
    %111 = arith.mulf %110, %108 : vector<8x256xf32>
    %c200 = arith.constant 200 : index
    %c0_30 = arith.constant 0 : index
    %112 = vector.load %arg6[%c200, %c0_30] : memref<360x256xf32, #tpu.memory_space<vmem>>, vector<8x256xf32>
    tpu.vector_store %arg6[%c200, %c0_30], %111 {strides = array<i32>} : memref<360x256xf32, #tpu.memory_space<vmem>>, vector<8x256xf32>,
    %113 = vector.extract_strided_slice %2 {offsets = [26, 0], sizes = [1, 256], strides = [1, 1]} : vector<45x256xf32> to vector<1x256xf32>
    %114 = vector.broadcast %113 : vector<1x256xf32> to vector<8x256xf32>
    %115 = arith.mulf %114, %108 : vector<8x256xf32>
    %c208 = arith.constant 208 : index
    %c0_31 = arith.constant 0 : index
    %116 = vector.load %arg6[%c208, %c0_31] : memref<360x256xf32, #tpu.memory_space<vmem>>, vector<8x256xf32>
    tpu.vector_store %arg6[%c208, %c0_31], %115 {strides = array<i32>} : memref<360x256xf32, #tpu.memory_space<vmem>>, vector<8x256xf32>,
    %117 = vector.extract_strided_slice %2 {offsets = [27, 0], sizes = [1, 256], strides = [1, 1]} : vector<45x256xf32> to vector<1x256xf32>
    %118 = vector.broadcast %117 : vector<1x256xf32> to vector<8x256xf32>
    %119 = arith.mulf %118, %108 : vector<8x256xf32>
    %c216 = arith.constant 216 : index
    %c0_32 = arith.constant 0 : index
    %120 = vector.load %arg6[%c216, %c0_32] : memref<360x256xf32, #tpu.memory_space<vmem>>, vector<8x256xf32>
    tpu.vector_store %arg6[%c216, %c0_32], %119 {strides = array<i32>} : memref<360x256xf32, #tpu.memory_space<vmem>>, vector<8x256xf32>,
    %121 = vector.extract_strided_slice %2 {offsets = [28, 0], sizes = [1, 256], strides = [1, 1]} : vector<45x256xf32> to vector<1x256xf32>
    %122 = vector.broadcast %121 : vector<1x256xf32> to vector<8x256xf32>
    %123 = arith.mulf %122, %108 : vector<8x256xf32>
    %c224 = arith.constant 224 : index
    %c0_33 = arith.constant 0 : index
    %124 = vector.load %arg6[%c224, %c0_33] : memref<360x256xf32, #tpu.memory_space<vmem>>, vector<8x256xf32>
    tpu.vector_store %arg6[%c224, %c0_33], %123 {strides = array<i32>} : memref<360x256xf32, #tpu.memory_space<vmem>>, vector<8x256xf32>,
    %125 = vector.extract_strided_slice %2 {offsets = [29, 0], sizes = [1, 256], strides = [1, 1]} : vector<45x256xf32> to vector<1x256xf32>
    %126 = vector.broadcast %125 : vector<1x256xf32> to vector<8x256xf32>
    %127 = arith.mulf %126, %108 : vector<8x256xf32>
    %c232 = arith.constant 232 : index
    %c0_34 = arith.constant 0 : index
    %128 = vector.load %arg6[%c232, %c0_34] : memref<360x256xf32, #tpu.memory_space<vmem>>, vector<8x256xf32>
    tpu.vector_store %arg6[%c232, %c0_34], %127 {strides = array<i32>} : memref<360x256xf32, #tpu.memory_space<vmem>>, vector<8x256xf32>,
    %129 = vector.extract_strided_slice %1 {offsets = [0, 32], sizes = [8, 256], strides = [1, 1]} : vector<8x290xf32> to vector<8x256xf32>
    %130 = vector.extract_strided_slice %2 {offsets = [30, 0], sizes = [1, 256], strides = [1, 1]} : vector<45x256xf32> to vector<1x256xf32>
    %131 = vector.broadcast %130 : vector<1x256xf32> to vector<8x256xf32>
    %132 = arith.mulf %131, %129 : vector<8x256xf32>
    %c240 = arith.constant 240 : index
    %c0_35 = arith.constant 0 : index
    %133 = vector.load %arg6[%c240, %c0_35] : memref<360x256xf32, #tpu.memory_space<vmem>>, vector<8x256xf32>
    tpu.vector_store %arg6[%c240, %c0_35], %132 {strides = array<i32>} : memref<360x256xf32, #tpu.memory_space<vmem>>, vector<8x256xf32>,
    %134 = vector.extract_strided_slice %2 {offsets = [31, 0], sizes = [1, 256], strides = [1, 1]} : vector<45x256xf32> to vector<1x256xf32>
    %135 = vector.broadcast %134 : vector<1x256xf32> to vector<8x256xf32>
    %136 = arith.mulf %135, %129 : vector<8x256xf32>
    %c248 = arith.constant 248 : index
    %c0_36 = arith.constant 0 : index
    %137 = vector.load %arg6[%c248, %c0_36] : memref<360x256xf32, #tpu.memory_space<vmem>>, vector<8x256xf32>
    tpu.vector_store %arg6[%c248, %c0_36], %136 {strides = array<i32>} : memref<360x256xf32, #tpu.memory_space<vmem>>, vector<8x256xf32>,
    %138 = vector.extract_strided_slice %2 {offsets = [32, 0], sizes = [1, 256], strides = [1, 1]} : vector<45x256xf32> to vector<1x256xf32>
    %139 = vector.broadcast %138 : vector<1x256xf32> to vector<8x256xf32>
    %140 = arith.mulf %139, %129 : vector<8x256xf32>
    %c256 = arith.constant 256 : index
    %c0_37 = arith.constant 0 : index
    %141 = vector.load %arg6[%c256, %c0_37] : memref<360x256xf32, #tpu.memory_space<vmem>>, vector<8x256xf32>
    tpu.vector_store %arg6[%c256, %c0_37], %140 {strides = array<i32>} : memref<360x256xf32, #tpu.memory_space<vmem>>, vector<8x256xf32>,
    %142 = vector.extract_strided_slice %2 {offsets = [33, 0], sizes = [1, 256], strides = [1, 1]} : vector<45x256xf32> to vector<1x256xf32>
    %143 = vector.broadcast %142 : vector<1x256xf32> to vector<8x256xf32>
    %144 = arith.mulf %143, %129 : vector<8x256xf32>
    %c264 = arith.constant 264 : index
    %c0_38 = arith.constant 0 : index
    %145 = vector.load %arg6[%c264, %c0_38] : memref<360x256xf32, #tpu.memory_space<vmem>>, vector<8x256xf32>
    tpu.vector_store %arg6[%c264, %c0_38], %144 {strides = array<i32>} : memref<360x256xf32, #tpu.memory_space<vmem>>, vector<8x256xf32>,
    %146 = vector.extract_strided_slice %2 {offsets = [34, 0], sizes = [1, 256], strides = [1, 1]} : vector<45x256xf32> to vector<1x256xf32>
    %147 = vector.broadcast %146 : vector<1x256xf32> to vector<8x256xf32>
    %148 = arith.mulf %147, %129 : vector<8x256xf32>
    %c272 = arith.constant 272 : index
    %c0_39 = arith.constant 0 : index
    %149 = vector.load %arg6[%c272, %c0_39] : memref<360x256xf32, #tpu.memory_space<vmem>>, vector<8x256xf32>
    tpu.vector_store %arg6[%c272, %c0_39], %148 {strides = array<i32>} : memref<360x256xf32, #tpu.memory_space<vmem>>, vector<8x256xf32>,
    %150 = vector.extract_strided_slice %1 {offsets = [0, 33], sizes = [8, 256], strides = [1, 1]} : vector<8x290xf32> to vector<8x256xf32>
    %151 = vector.extract_strided_slice %2 {offsets = [35, 0], sizes = [1, 256], strides = [1, 1]} : vector<45x256xf32> to vector<1x256xf32>
    %152 = vector.broadcast %151 : vector<1x256xf32> to vector<8x256xf32>
    %153 = arith.mulf %152, %150 : vector<8x256xf32>
    %c280 = arith.constant 280 : index
    %c0_40 = arith.constant 0 : index
    %154 = vector.load %arg6[%c280, %c0_40] : memref<360x256xf32, #tpu.memory_space<vmem>>, vector<8x256xf32>
    tpu.vector_store %arg6[%c280, %c0_40], %153 {strides = array<i32>} : memref<360x256xf32, #tpu.memory_space<vmem>>, vector<8x256xf32>,
    %155 = vector.extract_strided_slice %2 {offsets = [36, 0], sizes = [1, 256], strides = [1, 1]} : vector<45x256xf32> to vector<1x256xf32>
    %156 = vector.broadcast %155 : vector<1x256xf32> to vector<8x256xf32>
    %157 = arith.mulf %156, %150 : vector<8x256xf32>
    %c288 = arith.constant 288 : index
    %c0_41 = arith.constant 0 : index
    %158 = vector.load %arg6[%c288, %c0_41] : memref<360x256xf32, #tpu.memory_space<vmem>>, vector<8x256xf32>
    tpu.vector_store %arg6[%c288, %c0_41], %157 {strides = array<i32>} : memref<360x256xf32, #tpu.memory_space<vmem>>, vector<8x256xf32>,
    %159 = vector.extract_strided_slice %2 {offsets = [37, 0], sizes = [1, 256], strides = [1, 1]} : vector<45x256xf32> to vector<1x256xf32>
    %160 = vector.broadcast %159 : vector<1x256xf32> to vector<8x256xf32>
    %161 = arith.mulf %160, %150 : vector<8x256xf32>
    %c296 = arith.constant 296 : index
    %c0_42 = arith.constant 0 : index
    %162 = vector.load %arg6[%c296, %c0_42] : memref<360x256xf32, #tpu.memory_space<vmem>>, vector<8x256xf32>
    tpu.vector_store %arg6[%c296, %c0_42], %161 {strides = array<i32>} : memref<360x256xf32, #tpu.memory_space<vmem>>, vector<8x256xf32>,
    %163 = vector.extract_strided_slice %2 {offsets = [38, 0], sizes = [1, 256], strides = [1, 1]} : vector<45x256xf32> to vector<1x256xf32>
    %164 = vector.broadcast %163 : vector<1x256xf32> to vector<8x256xf32>
    %165 = arith.mulf %164, %150 : vector<8x256xf32>
    %c304 = arith.constant 304 : index
    %c0_43 = arith.constant 0 : index
    %166 = vector.load %arg6[%c304, %c0_43] : memref<360x256xf32, #tpu.memory_space<vmem>>, vector<8x256xf32>
    tpu.vector_store %arg6[%c304, %c0_43], %165 {strides = array<i32>} : memref<360x256xf32, #tpu.memory_space<vmem>>, vector<8x256xf32>,
    %167 = vector.extract_strided_slice %2 {offsets = [39, 0], sizes = [1, 256], strides = [1, 1]} : vector<45x256xf32> to vector<1x256xf32>
    %168 = vector.broadcast %167 : vector<1x256xf32> to vector<8x256xf32>
    %169 = arith.mulf %168, %150 : vector<8x256xf32>
    %c312 = arith.constant 312 : index
    %c0_44 = arith.constant 0 : index
    %170 = vector.load %arg6[%c312, %c0_44] : memref<360x256xf32, #tpu.memory_space<vmem>>, vector<8x256xf32>
    tpu.vector_store %arg6[%c312, %c0_44], %169 {strides = array<i32>} : memref<360x256xf32, #tpu.memory_space<vmem>>, vector<8x256xf32>,
    %171 = vector.extract_strided_slice %1 {offsets = [0, 34], sizes = [8, 256], strides = [1, 1]} : vector<8x290xf32> to vector<8x256xf32>
    %172 = vector.extract_strided_slice %2 {offsets = [40, 0], sizes = [1, 256], strides = [1, 1]} : vector<45x256xf32> to vector<1x256xf32>
    %173 = vector.broadcast %172 : vector<1x256xf32> to vector<8x256xf32>
    %174 = arith.mulf %173, %171 : vector<8x256xf32>
    %c320 = arith.constant 320 : index
    %c0_45 = arith.constant 0 : index
    %175 = vector.load %arg6[%c320, %c0_45] : memref<360x256xf32, #tpu.memory_space<vmem>>, vector<8x256xf32>
    tpu.vector_store %arg6[%c320, %c0_45], %174 {strides = array<i32>} : memref<360x256xf32, #tpu.memory_space<vmem>>, vector<8x256xf32>,
    %176 = vector.extract_strided_slice %2 {offsets = [41, 0], sizes = [1, 256], strides = [1, 1]} : vector<45x256xf32> to vector<1x256xf32>
    %177 = vector.broadcast %176 : vector<1x256xf32> to vector<8x256xf32>
    %178 = arith.mulf %177, %171 : vector<8x256xf32>
    %c328 = arith.constant 328 : index
    %c0_46 = arith.constant 0 : index
    %179 = vector.load %arg6[%c328, %c0_46] : memref<360x256xf32, #tpu.memory_space<vmem>>, vector<8x256xf32>
    tpu.vector_store %arg6[%c328, %c0_46], %178 {strides = array<i32>} : memref<360x256xf32, #tpu.memory_space<vmem>>, vector<8x256xf32>,
    %180 = vector.extract_strided_slice %2 {offsets = [42, 0], sizes = [1, 256], strides = [1, 1]} : vector<45x256xf32> to vector<1x256xf32>
    %181 = vector.broadcast %180 : vector<1x256xf32> to vector<8x256xf32>
    %182 = arith.mulf %181, %171 : vector<8x256xf32>
    %c336 = arith.constant 336 : index
    %c0_47 = arith.constant 0 : index
    %183 = vector.load %arg6[%c336, %c0_47] : memref<360x256xf32, #tpu.memory_space<vmem>>, vector<8x256xf32>
    tpu.vector_store %arg6[%c336, %c0_47], %182 {strides = array<i32>} : memref<360x256xf32, #tpu.memory_space<vmem>>, vector<8x256xf32>,
    %184 = vector.extract_strided_slice %2 {offsets = [43, 0], sizes = [1, 256], strides = [1, 1]} : vector<45x256xf32> to vector<1x256xf32>
    %185 = vector.broadcast %184 : vector<1x256xf32> to vector<8x256xf32>
    %186 = arith.mulf %185, %171 : vector<8x256xf32>
    %c344 = arith.constant 344 : index
    %c0_48 = arith.constant 0 : index
    %187 = vector.load %arg6[%c344, %c0_48] : memref<360x256xf32, #tpu.memory_space<vmem>>, vector<8x256xf32>
    tpu.vector_store %arg6[%c344, %c0_48], %186 {strides = array<i32>} : memref<360x256xf32, #tpu.memory_space<vmem>>, vector<8x256xf32>,
    %188 = vector.extract_strided_slice %2 {offsets = [44, 0], sizes = [1, 256], strides = [1, 1]} : vector<45x256xf32> to vector<1x256xf32>
    %189 = vector.broadcast %188 : vector<1x256xf32> to vector<8x256xf32>
    %190 = arith.mulf %189, %171 : vector<8x256xf32>
    %c352 = arith.constant 352 : index
    %c0_49 = arith.constant 0 : index
    %191 = vector.load %arg6[%c352, %c0_49] : memref<360x256xf32, #tpu.memory_space<vmem>>, vector<8x256xf32>
    tpu.vector_store %arg6[%c352, %c0_49], %190 {strides = array<i32>} : memref<360x256xf32, #tpu.memory_space<vmem>>, vector<8x256xf32>,
    %c0_50 = arith.constant 0 : index
    %c0_51 = arith.constant 0 : index
    %192 = vector.load %arg3[%c0_50, %c0_51] : memref<8x360xf32, #tpu.memory_space<vmem>>, vector<8x360xf32>
    %c0_52 = arith.constant 0 : index
    %c0_53 = arith.constant 0 : index
    %193 = vector.load %arg6[%c0_52, %c0_53] : memref<360x256xf32, #tpu.memory_space<vmem>>, vector<360x256xf32>
    %cst = arith.constant dense<0.000000e+00> : vector<8x256xf32>
    %194 = tpu.matmul %192, %193, %cst {dimension_numbers = #tpu.dot_dimension_numbers<[1], [0], [0], [1], [0, 0, 1, 1], [], []>} : vector<8x360xf32>, vector<360x256xf32>, vector<8x256xf32> -> vector<8x256xf32>
    %c0_54 = arith.constant 0 : index
    %c0_55 = arith.constant 0 : index
    %195 = vector.load %arg4[%c0_54, %c0_55] : memref<8x256xf32, #tpu.memory_space<vmem>>, vector<8x256xf32>
    %196 = arith.addf %194, %195 : vector<8x256xf32>
    %c0_56 = arith.constant 0 : index
    %c0_57 = arith.constant 0 : index
    %c0_58 = arith.constant 0 : index
    %197 = vector.load %arg5[%c0_56, %c0_57, %c0_58] : memref<1x8x256xf32, #tpu.memory_space<vmem>>, vector<1x8x256xf32>
    %198 = vector.shape_cast %197 : vector<1x8x256xf32> to vector<8x256xf32>
    %199 = vector.shape_cast %196 : vector<8x256xf32> to vector<1x8x256xf32>
    tpu.vector_store %arg5[%c0_56, %c0_57, %c0_58], %199 {strides = array<i32>} : memref<1x8x256xf32, #tpu.memory_space<vmem>>, vector<1x8x256xf32>,
    return
  }
  func.func @transform_0(%arg0: i32) -> (i32, i32, i32) {
    %c0_i32 = arith.constant 0 : i32
    %c0_i32_0 = arith.constant 0 : i32
    %c0_i32_1 = arith.constant 0 : i32
    return %arg0, %c0_i32, %c0_i32_0 : i32, i32, i32
  }
  func.func @transform_1(%arg0: i32) -> (i32, i32) {
    %c0_i32 = arith.constant 0 : i32
    %c0_i32_0 = arith.constant 0 : i32
    %c0_i32_1 = arith.constant 0 : i32
    return %c0_i32, %c0_i32_0 : i32, i32
  }
  func.func @transform_2(%arg0: i32) -> (i32, i32) {
    %c0_i32 = arith.constant 0 : i32
    %c0_i32_0 = arith.constant 0 : i32
    %c0_i32_1 = arith.constant 0 : i32
    return %c0_i32, %c0_i32_0 : i32, i32
  }
  func.func @transform_3(%arg0: i32) -> (i32, i32) {
    %c0_i32 = arith.constant 0 : i32
    %c0_i32_0 = arith.constant 0 : i32
    %c0_i32_1 = arith.constant 0 : i32
    return %c0_i32, %c0_i32_0 : i32, i32
  }
  func.func @transform_4(%arg0: i32) -> (i32, i32, i32) {
    %c0_i32 = arith.constant 0 : i32
    %c0_i32_0 = arith.constant 0 : i32
    %c0_i32_1 = arith.constant 0 : i32
    return %arg0, %c0_i32, %c0_i32_0 : i32, i32, i32
  }
}

</mosaic_0001>

<bundles_post_ra>
// kernel: tpu_custom_call.1
= control target key start
LH: loop header
LB: loop body
LE: loop exit
PB: predicated region body
PF: predicated region fallthrough
CT: control target
= control target key end

     0   :  { %s1686_s0 = inlined_call_operand.hbm [shape: f32[2,8,290], index: 0, kind: input, shape index: {}]   ;;  %s1687_s1 = inlined_call_operand.hbm [shape: f32[45,256], index: 1, kind: input, shape index: {}]   ;;  %s1688_s2 = inlined_call_operand.hbm [shape: f32[8,360], index: 2, kind: input, shape index: {}]   ;;  %s1689_s3 = inlined_call_operand.hbm [shape: f32[8,256], index: 3, kind: input, shape index: {}]   ;;  %s1690_s4 = inlined_call_operand.hbm [shape: f32[2,8,256], index: 4, kind: output, shape index: {}]  }
   0x1   :  { %1691 = sst [smem:[#allocation16_spill]] %s1687_s1 }
   0x2   :  { %9 = vsyncpa [#allocation4], 0 }
   0x3   :  { %11 = vsyncpa [#allocation4 + $0x1], 0 }
   0x4   :  { %12 = vsyncpa [#allocation7], 0 }
   0x5   :  { %13 = vsyncpa [#allocation10], 0 }
   0x6   :  { %14 = vsyncpa [#allocation5], 0 }
   0x7   :  { %16 = vsyncpa [#allocation5 + $0x1], 0  ;;  %s1319_s15 = smov 0   ;;  %s1321_s16 = smov 0  }
   0x8   :  { %s1323_s17 = smov 0   ;;  %s1325_s18 = smov 0  }
   0x9 LB: > { %s1692_s1 = sld [smem:[#allocation16_spill]]  ;;  %s1343_s22 = sadd.s32 4294967295, %s1279_s18   ;;  %s1279_s18 = sphi %s1325_s18, %s1703_s18   ;;  %s1275_s17 = sphi %s1323_s17, %s1702_s17   ;;  %s1271_s16 = sphi %s1321_s16, %s1701_s16   ;;  %s1267_s15 = sphi %s1319_s15, %s1700_s15  }
   0xa   : > { %p976_p0 = scmp.ge.s32.totalorder %s1279_s18, 1  ;;  %p43_p1 = scmp.eq.s32.totalorder %s1343_s22, 0 }
   0xb   : > { %p142_p2 = scmp.lt.s32.totalorder %s1279_s18, 3  ;;  %s1281_s24 = smov [#allocation6]  }
   0xc   : > { %s155_s25 = sshll.u32 %s1281_s24, 4  ;;  %s168_s28 = sshll.u32 %s1688_s2, 4  ;;  %s156_s25 = int_to_ptr.vmem [resolvable:$true] %s155_s25  ;;  %s169_s28 = int_to_ptr.hbm [resolvable:$true] %s168_s28 }
   0xd   : > { %p1348_p3 = pnand %p976_p0, %p142_p2  ;;  %s180_s6 = sshll.u32 %s1689_s3, 4  ;;  %s181_s6 = int_to_ptr.hbm [resolvable:$true] %s180_s6 }
   0xe   : > { %s1282_s7 = smov [#allocation8]   ;;  %s1283_s9 = smov 256  }
   0xf   : > { %s153_s21 = sshll.u32 %s1692_s1, 4  ;;  %p1014_p4 = pneg %p1348_p3  ;;  %s154_s21 = int_to_ptr.hbm [resolvable:$true] %s153_s21 }
  0x10   : > { %s170_s8 = sshll.u32 %s1282_s7, 4  ;;  %s1284_s10 = smov 16   ;;  %s171_s8 = int_to_ptr.vmem [resolvable:$true] %s170_s8 }
  0x11   : > { %p1360_p6 = pnand %p1014_p4, %p43_p1  ;;  %s1285_s11 = smov [#allocation9]  }
  0x12   : > { %s182_s12 = sshll.u32 %s1285_s11, 4  ;;  %s975_s13 = sadd.s32 4294967294, %s1279_s18   ;;  %s183_s12 = int_to_ptr.vmem [resolvable:$true] %s182_s12 }
  0x13   : > { %1017 = dma.hbm_to_vmem [thread:$0]  (!%p1360_p6), %s154_s21, 1536, %s156_s25, [#allocation7], %s1283_s9, %s1283_s9, %s1284_s10  }
  0x14   : > { %1020 = dma.hbm_to_vmem [thread:$0]  (!%p1360_p6), %s169_s28, 384, %s171_s8, [#allocation7]  }
  0x15   : > { %1023 = dma.hbm_to_vmem [thread:$0]  (!%p1360_p6), %s181_s6, 256, %s183_s12, [#allocation10]  }
  0x16   : > { %s1375_s14 = sadd.s32 1, %s1279_s18   ;;  %s29_s19 = sadd.s32 1, %s1275_s17 }
  0x17   : > { %s26_s20 = ssub.s32 %s1279_s18, %s1375_s14  ;;  %p36_p7 = scmp.ne.s32.totalorder %s1275_s17, %s1271_s16 }
  0x18   : > { %p27_p8 = scmp.eq.s32.totalorder %s26_s20, 0  ;;  %p37_p9 = scmp.eq.s32.totalorder %s1279_s18, 0 }
  0x19   : > { %p42_p10 = scmp.ne.s32.totalorder %s1271_s16, %s1267_s15  ;;  %p129_p11 = scmp.eq.s32.totalorder %s1343_s22, 1 }
  0x1a   : > { %s1387_s21 = scalar_select %p27_p8, %s1275_s17, %s29_s19  }
  0x1b   : > { %p38_p12 = por %p37_p9, %p36_p7  ;;  %p1391_p13 = por %p43_p1, %p42_p10 }
  0x1c   : > { %p1395_p0 = por %p129_p11, %p36_p7  ;;  %p135_p2 = scmp.eq.s32.totalorder %s975_s13, 1 }
  0x1d   : > { %p1035_p4 = scmp.lt.s32.totalorder %s1279_s18, 2  ;;  %s193_s26 = sand.u32 1, %s1275_s17  }
  0x1e   : > { %p1401_p6 = por %p135_p2, %p42_p10  ;;  %s995_s28 = smul.u32 24, %s193_s26 }
  0x1f   : > { %p1405_p8 = pnand %p1035_p4, %p38_p12  ;;  %s996_s30 = smul.u32 24, %s1279_s18 }
  0x20   : > { %s197_s8 = scalar_lea.vmem [#allocation3], %s995_s28  ;;  %s194_s11 = scalar_lea.sflag [#allocation4], %s193_s26 }
  0x21   : > { %s202_s7 = scalar_lea.hbm %s1686_s0, %s996_s30  ;;  %s206_s9 = sshll.u32 %s197_s8, 4  ;;  %s207_s9 = int_to_ptr.vmem [resolvable:$true] %s206_s9 }
  0x22   : > { %s204_s10 = sshll.u32 %s202_s7, 4  ;;  %p1179_p9 = pneg %p1405_p8  ;;  %s205_s10 = int_to_ptr.hbm [resolvable:$true] %s204_s10 }
  0x23   : > { %s1175_s12 = sshra.s32 %s205_s10, 4  ;;  %s1182_s1 = scalar_lea.hbm %s1686_s0, 48  ;;  %s1176_s12 = int_to_ptr.hbm [resolvable:$true] %s1175_s12 }
  0x24   : > { %s1177_s13 = scalar_lea.hbm %s1176_s12, 24  ;;  %p1183_p12 = scmp.lt.s32.totalorder %s1176_s12, %s1686_s0 }
  0x25   : > { %p1178_p7 = scmp.ne.s32.totalorder %s1176_s12, %s1177_s13  ;;  %p1184_p2 = scmp.lt.s32.totalorder %s1182_s1, %s1177_s13 }
  0x27   : > { %p1180_p10 = pnand %p1179_p9, %p1178_p7  ;;  %p1185_p4 = por %p1184_p2, %p1183_p12 }
  0x29   : > { %p1181_p11 = pneg %p1180_p10 }
  0x2b   : > { %p1186_p5 = pnand %p1185_p4, %p1181_p11 }
  0x2d   : > { %1189 = shalt.err (!%p1186_p5)
}
  0x2e   : > { %1027 = dma.hbm_to_vmem [thread:$0]  (!%p1405_p8), %s205_s10, 384, %s207_s9, %s194_s11  }
  0x2f   : > { %215 = sbr.rel (%p1348_p3) target bundleno = 400 (0x190), region = 36  ;;  %s1426_s26 = sand.u32 (!%p1348_p3), 1, %s1271_s16  }
  0x30   : > { %s997_s28 = smul.u32 (!%p1348_p3), 24, %s1426_s26  ;;  %s218_s6 = scalar_lea.sflag (!%p1348_p3), [#allocation4], %s1426_s26 }
  0x32   : > { %s221_s7 = scalar_lea.vmem (!%p1348_p3), [#allocation3], %s997_s28 }
  0x34   : > { %1250 = dma.done.wait (%p1391_p13), %s218_s6, 384  }
  0x35   : > { %1252 = vsyncadd (%p1391_p13), %s218_s6, 4294966912 }
  0x36   : > { %1254 = dma.done.wait (%p43_p1), [#allocation7], 1920  }
  0x37   : > { %1256 = vsyncadd (%p43_p1), [#allocation7], 4294965376 }
  0x38   : > { %1258 = dma.done.wait (%p43_p1), [#allocation10], 256  }
  0x39   : > { %1260 = vsyncadd (%p43_p1), [#allocation10], 4294967040  ;;  %v1442_v0 = vld [vmem:[%s221_s7 + $0x8] sm:$0xff]  ;;  %v1444_v1 = vld [vmem:[%s221_s7] sm:$0xff]  ;;  %s1286_s1 = smov 112   ;;  %s1287_s23 = smov 94  }
  0x3a   : > { %396 = vrot.lane.b32.xlu0 %v1442_v0, %s1286_s1  ;;  %599 = vrot.lane.b32.xlu1 %v1444_v1, %s1287_s23  ;;  %s1288_s24 = smov 126   ;;  %v264_v2 = vld [vmem:[%s221_s7 + $0x10] sm:$0xff]  ;;  %s1289_s29 = smov 96   ;;  %v275_v8 = vld [vmem:[#allocation6 + $0x50] sm:$0x1f]  ;;  %vm359_vm0 = vcmask 1031168  }
  0x3b   : > { %355 = vrot.lane.b32.xlu2 %v1442_v0, %s1288_s24  ;;  %s1290_s8 = smov 110   ;;  %s1291_s9 = smov 95   ;;  %v1464_v9 = vld [vmem:[#allocation6 + $0x18] sm:$0xff]  ;;  %vm400_vm1 = vcmask 916480   ;;  %vm605_vm2 = vcmask 769024   ;;  %v632_v10 = vperm.slane %v275_v8, 4 }
  0x3c   : > { %s1292_s10 = smov 127   ;;  %s1293_s11 = smov 111   ;;  %v393_v11 = vperm.slane %v1464_v9, 7  ;;  %v626_v14 = vperm.slane %v275_v8, 3  ;;  %v387_v15 = vperm.slane %v1464_v9, 6  ;;  %v381_v21 = vperm.slane %v1464_v9, 5 }
  0x3d   : > { %v620_v22 = vperm.slane %v275_v8, 2  ;;  %v1478_v23 = vld [vmem:[#allocation6 + $0x10] sm:$0xff]  ;;  %v614_v26 = vperm.slane %v275_v8, 1  ;;  %v375_v27 = vperm.slane %v1464_v9, 4  ;;  %v597_v32 = vperm.slane %v275_v8, 0  ;;  %v1500_v52 = vld [vmem:[#allocation6 + $0x40] sm:$0xff] }
  0x3e   : > { %v392_v31 = vperm.slane %v1478_v23, 7  ;;  %v369_v33 = vperm.slane %v1464_v9, 3  ;;  %v352_v39 = vperm.slane %v1464_v9, 2  ;;  %v386_v44 = vperm.slane %v1478_v23, 6  ;;  %v1504_v56 = vld [vmem:[#allocation6 + $0x30] sm:$0xff]  ;;  %s986_s12 = sshll.u32 %s1426_s26, 4 }
  0x3f   : > { %v380_v48 = vperm.slane %v1478_v23, 5  ;;  %v374_v51 = vperm.slane %v1478_v23, 4  ;;  %v368_v54 = vperm.slane %v1478_v23, 3  ;;  %v351_v55 = vperm.slane %v1478_v23, 2  ;;  %s261_s13 = scalar_lea.vmem [#allocation11], %s986_s12  ;;  %s994_s19 = sshll.u32 %s1343_s22, 4 }
  0x40   : > { %vm564_vm3 = vcmask 777216   ;;  %v532_v58 = vperm.slane %v1504_v56, 7  ;;  %v591_v59 = vperm.slane %v1500_v52, 7  ;;  %v585_v60 = vperm.slane %v1500_v52, 6  ;;  %s871_s30 = scalar_lea.hbm %s1690_s4, %s994_s19  ;;  %s873_s28 = sshll.u32 %s261_s13, 4  ;;  %s874_s28 = int_to_ptr.vmem [resolvable:$true] %s873_s28 }
  0x41   : > { %vm523_vm4 = vcmask 785408   ;;  %vm482_vm5 = vcmask 900096   ;;  %vm318_vm6 = vcmask 1039360   ;;  %vm733_vm7 = vcmask 850944   ;;  %s875_s6 = sshll.u32 %s871_s30, 4  ;;  %s860_s7 = scalar_lea.sflag [#allocation5], %s1426_s26  ;;  %s876_s6 = int_to_ptr.hbm [resolvable:$true] %s875_s6 }
  0x42   : > { %398 = vrot.lane.b32.xlu0 %v264_v2, %s1286_s1  ;;  %601 = vrot.lane.b32.xlu1 %v1442_v0, %s1287_s23  ;;  %vm441_vm8 = vcmask 908288  }
  0x43   : > { %357 = vrot.lane.b32.xlu2 %v264_v2, %s1288_s24 }
  0x4a   : > { %394 = vrot.lane.b32.xlu0 %v1444_v1, %s1286_s1  ;;  %519 = vrot.lane.b32.xlu1 %v1442_v0, %s1289_s29  ;;  %s1219_s1 = sshra.s32 %s876_s6, 4  ;;  %s1220_s1 = int_to_ptr.hbm [resolvable:$true] %s1219_s1 }
  0x4b   : > { %521 = vrot.lane.b32.xlu2 %v264_v2, %s1289_s29  ;;  %p1226_p13 = scmp.lt.s32.totalorder %s1220_s1, %s1690_s4 }
  0x52   : > { %353 = vrot.lane.b32.xlu0 %v1444_v1, %s1288_s24  ;;  %478 = vrot.lane.b32.xlu1 %v1442_v0, %s1290_s8 }
  0x53   : > { %480 = vrot.lane.b32.xlu2 %v264_v2, %s1290_s8 }
  0x5a   : > { %517 = vrot.lane.b32.xlu0 %v1444_v1, %s1289_s29  ;;  %558 = vrot.lane.b32.xlu1 %v1444_v1, %s1291_s9  ;;  %s1225_s29 = scalar_lea.hbm %s1690_s4, 32 }
  0x5b   : > { %560 = vrot.lane.b32.xlu2 %v1442_v0, %s1291_s9 }
  0x62   : > { %314 = vrot.lane.b32.xlu0 %v1442_v0, %s1292_s10  ;;  %316 = vrot.lane.b32.xlu1 %v264_v2, %s1292_s10 }
  0x63   : > { %476 = vrot.lane.b32.xlu2 %v1444_v1, %s1290_s8 }
  0x6a   : > { %312 = vrot.lane.b32.xlu0 %v1444_v1, %s1292_s10  ;;  %437 = vrot.lane.b32.xlu1 %v1442_v0, %s1293_s11 }
  0x6b   : > { %439 = vrot.lane.b32.xlu2 %v264_v2, %s1293_s11 }
  0x72   : > { %603 = vrot.lane.b32.xlu0 %v264_v2, %s1287_s23  ;;  %435 = vrot.lane.b32.xlu1 %v1444_v1, %s1293_s11  ;;  %s1221_s23 = scalar_lea.hbm %s1220_s1, 16 }
  0x73   : > { %562 = vrot.lane.b32.xlu2 %v264_v2, %s1291_s9  ;;  %v515_v2 = vperm.slane %v1504_v56, 6  ;;  %p1222_p1 = scmp.ne.s32.totalorder %s1220_s1, %s1221_s23  ;;  %p1227_p8 = scmp.lt.s32.totalorder %s1225_s29, %s1221_s23 }
  0x75   : > { %p1223_p3 = pnand %p1222_p1, %p1395_p0  ;;  %p1228_p7 = por %p1227_p8, %p1226_p13 }
  0x77   : > { %p1224_p5 = pneg %p1223_p3 }
  0x79   : > { %p1229_p9 = pnand %p1228_p7, %p1224_p5 }
  0x95   : > { %v356_v3 = vpop.permute.xlu2 %355 }
  0x9d   : > { %v358_v4 = vpop.permute.xlu2 %357 }
  0x9e   : > { %v361_v16 = vsel %vm359_vm0, %v356_v3, %v358_v4 }
  0x9f   : > { %v389_v25 = vmul.f32 %v387_v15, %v361_v16  ;;  %v383_v29 = vmul.f32 %v381_v21, %v361_v16  ;;  %v377_v37 = vmul.f32 %v375_v27, %v361_v16  ;;  %v371_v42 = vmul.f32 %v369_v33, %v361_v16  ;;  %v1527_v27 = vld [vmem:[#allocation6 + $0x8] sm:$0xff] }
  0xa0   : > { %v365_v43 = vmul.f32 %v361_v16, %v352_v39  ;;  %v573_v16 = vperm.slane %v1500_v52, 4  ;;  %v340_v33 = vperm.slane %v1464_v9, 0 }
  0xa5   : > { %v1462_v7 = vpop.permute.xlu2 %521 }
  0xac   : > { %v397_v5 = vpop.permute.xlu0 %396  ;;  %v600_v6 = vpop.permute.xlu1 %599 }
  0xad   : > { %v1481_v28 = vpop.permute.xlu2 %480 }
  0xb4   : > { %v399_v12 = vpop.permute.xlu0 %398  ;;  %v1467_v13 = vpop.permute.xlu1 %601 }
  0xb5   : > { %v1472_v17 = vsel %vm400_vm1, %v397_v5, %v399_v12  ;;  %v606_v18 = vsel %vm605_vm2, %v600_v6, %v1467_v13  ;;  %v1493_v45 = vpop.permute.xlu2 %560  ;;  %v509_v12 = vperm.slane %v1504_v56, 5 }
  0xb6   : > { %v634_v19 = vmul.f32 %v632_v10, %v606_v18  ;;  %v406_v20 = vmul.f32 %v1472_v17, %v393_v11  ;;  %v628_v24 = vmul.f32 %v626_v14, %v606_v18  ;;  %v622_v30 = vmul.f32 %v620_v22, %v606_v18 }
  0xb7   : > { %v616_v36 = vmul.f32 %v614_v26, %v606_v18  ;;  %v610_v41 = vmul.f32 %v606_v18, %v597_v32  ;;  %v497_v22 = vperm.slane %v1504_v56, 3  ;;  %v556_v26 = vperm.slane %v1500_v52, 3 }
  0xb8   : > { %780 = vmatpush.msra.mxu2 %v634_v19  ;;  %797 = vmatpush.msra.mxu3 %v406_v20  ;;  %v503_v19 = vperm.slane %v1504_v56, 4  ;;  %v491_v32 = vperm.slane %v1504_v56, 2 }
  0xba   : > { %781 = vmatpush.msra.mxu2 %v628_v24  ;;  %798 = vmatpush.msra.mxu3 %v389_v25  ;;  %v346_v24 = vperm.slane %v1464_v9, 1 }
  0xbc   : > { %799 = vmatpush.msra.mxu3 %v383_v29  ;;  %v395_v34 = vpop.permute.xlu0 %394  ;;  %782 = vmatpush.msra.mxu2 %v622_v30  ;;  %v1485_v35 = vpop.permute.xlu1 %519 }
  0xbd   : > { %v1488_v38 = vsel %vm400_vm1, %v395_v34, %v397_v5  ;;  %v579_v5 = vperm.slane %v1500_v52, 5  ;;  %v477_v6 = vpop.permute.xlu2 %476 }
  0xbe   : > { %783 = vmatpush.msra.mxu2 %v616_v36  ;;  %800 = vmatpush.msra.mxu3 %v377_v37  ;;  %v405_v40 = vmul.f32 %v1488_v38, %v392_v31  ;;  %v550_v36 = vperm.slane %v1500_v52, 2 }
  0xc0   : > { %737 = vmatpush.msra.mxu0 %v405_v40  ;;  %784 = vmatpush.msra.mxu2 %v610_v41  ;;  %v474_v40 = vperm.slane %v1504_v56, 1  ;;  %v334_v41 = vperm.slane %v1527_v27, 7 }
  0xc1   : > { %801 = vmatpush.msra.mxu3 %v371_v42  ;;  %v1535_v42 = vld [vmem:[#allocation6 + $0x38] sm:$0xff] }
  0xc3   : > { %802 = vmatpush.msra.mxu3 %v365_v43 }
  0xc4   : > { %v354_v46 = vpop.permute.xlu0 %353  ;;  %v1495_v47 = vpop.permute.xlu1 %478 }
  0xc5   : > { %v360_v49 = vsel %vm359_vm0, %v354_v46, %v356_v3  ;;  %v483_v14 = vsel %vm482_vm5, %v477_v6, %v1495_v47 }
  0xc6   : > { %v388_v50 = vmul.f32 %v386_v44, %v360_v49  ;;  %v382_v53 = vmul.f32 %v380_v48, %v360_v49  ;;  %v376_v57 = vmul.f32 %v374_v51, %v360_v49  ;;  %v370_v63 = vmul.f32 %v368_v54, %v360_v49 }
  0xc7   : > { %v364_v8 = vmul.f32 %v360_v49, %v351_v55  ;;  %v511_v21 = vmul.f32 %v509_v12, %v483_v14  ;;  %v505_v31 = vmul.f32 %v503_v19, %v483_v14  ;;  %v499_v37 = vmul.f32 %v497_v22, %v483_v14 }
  0xc8   : > { %738 = vmatpush.msra.mxu0 %v388_v50  ;;  %v544_v44 = vperm.slane %v1500_v52, 1  ;;  %v493_v9 = vmul.f32 %v491_v32, %v483_v14  ;;  %v328_v48 = vperm.slane %v1527_v27, 6  ;;  %v538_v50 = vperm.slane %v1500_v52, 0 }
  0xc9   : > { %v533_v51 = vperm.slane %v1535_v42, 7  ;;  %v345_v55 = vperm.slane %v1478_v23, 1  ;;  %v308_v52 = vperm.slane %v1527_v27, 5  ;;  %v492_v22 = vperm.slane %v1535_v42, 2 }
  0xca   : > { %739 = vmatpush.msra.mxu0 %v382_v53  ;;  %v487_v53 = vmul.f32 %v483_v14, %v474_v40 }
  0xcc   : > { %740 = vmatpush.msra.mxu0 %v376_v57  ;;  %v518_v61 = vpop.permute.xlu0 %517  ;;  %v559_v62 = vpop.permute.xlu1 %558  ;;  %v516_v57 = vperm.slane %v1535_v42, 6 }
  0xcd   : > { %v1512_v3 = vsel %vm523_vm4, %v518_v61, %v1485_v35  ;;  %v565_v4 = vsel %vm564_vm3, %v559_v62, %v1493_v45  ;;  %v302_v61 = vperm.slane %v1527_v27, 4 }
  0xce   : > { %741 = vmatpush.msra.mxu0 %v370_v63  ;;  %v534_v10 = vmul.f32 %v532_v58, %v1512_v3  ;;  %v593_v11 = vmul.f32 %v591_v59, %v565_v4  ;;  %v587_v15 = vmul.f32 %v585_v60, %v565_v4  ;;  %v528_v18 = vmul.f32 %v1512_v3, %v515_v2  ;;  %v1551_v60 = vld [vmem:[#allocation6] sm:$0xff] }
  0xcf   : > { %v581_v20 = vmul.f32 %v579_v5, %v565_v4  ;;  %v575_v25 = vmul.f32 %v573_v16, %v565_v4  ;;  %v569_v43 = vmul.f32 %v565_v4, %v556_v26  ;;  %v552_v49 = vmul.f32 %v550_v36, %v1512_v3 }
  0xd0   : > { %742 = vmatpush.msra.mxu0 %v364_v8  ;;  %757 = vmatpush.msra.mxu1 %v534_v10  ;;  %v1547_v58 = vsel %vm523_vm4, %v1485_v35, %v1462_v7  ;;  %v546_v59 = vmul.f32 %v544_v44, %v1512_v3  ;;  %v339_v4 = vperm.slane %v1478_v23, 0  ;;  %v510_v7 = vperm.slane %v1535_v42, 5  ;;  %v1565_v23 = vld [vmem:[#allocation8 + $0x10] sm:$0xff] }
  0xd1   : > { %785 = vmatpush.msra.mxu2 %v593_v11  ;;  %v504_v35 = vperm.slane %v1535_v42, 4  ;;  %v540_v6 = vmul.f32 %v538_v50, %v1512_v3  ;;  %v498_v8 = vperm.slane %v1535_v42, 3  ;;  %v296_v10 = vperm.slane %v1527_v27, 3 }
  0xd2   : > { %758 = vmatpush.msra.mxu1 %v528_v18  ;;  %v535_v11 = vmul.f32 %v533_v51, %v1547_v58  ;;  %v333_v14 = vperm.slane %v1551_v60, 7  ;;  %v304_v3 = vmul.f32 %v302_v61, %v1442_v0  ;;  %v290_v18 = vperm.slane %v1527_v27, 2 }
  0xd3   : > { %786 = vmatpush.msra.mxu2 %v587_v15  ;;  %v484_v15 = vsel %vm482_vm5, %v1495_v47, %v1481_v28  ;;  %v529_v19 = vmul.f32 %v1547_v58, %v516_v57  ;;  %v298_v28 = vmul.f32 %v296_v10, %v1442_v0  ;;  %v284_v47 = vperm.slane %v1527_v27, 1  ;;  %v1601_v57 = vld [vmem:[#allocation6 + $0x28] sm:$0xff] }
  0xd4   : > { %v315_v29 = vpop.permute.xlu0 %314  ;;  %759 = vmatpush.msra.mxu1 %v511_v21  ;;  %v317_v30 = vpop.permute.xlu1 %316  ;;  %v327_v21 = vperm.slane %v1551_v60, 6  ;;  %v278_v36 = vperm.slane %v1527_v27, 0  ;;  %v469_v50 = vperm.slane %v1535_v42, 0  ;;  %v289_v51 = vperm.slane %v1551_v60, 2 }
  0xd5   : > { %787 = vmatpush.msra.mxu2 %v581_v20  ;;  %v320_v34 = vsel %vm318_vm6, %v315_v29, %v317_v30  ;;  %v468_v30 = vperm.slane %v1504_v56, 0 }
  0xd6   : > { %760 = vmatpush.msra.mxu1 %v505_v31  ;;  %v348_v39 = vmul.f32 %v346_v24, %v320_v34  ;;  %v342_v46 = vmul.f32 %v340_v33, %v320_v34  ;;  %v336_v54 = vmul.f32 %v334_v41, %v320_v34  ;;  %v330_v2 = vmul.f32 %v328_v48, %v320_v34  ;;  %v1582_v31 = vld [vmem:[#allocation6 + $0x20] sm:$0xff]  ;;  %v440_v48 = vpop.permute.xlu2 %439 }
  0xd7   : > { %788 = vmatpush.msra.mxu2 %v575_v25  ;;  %v324_v16 = vmul.f32 %v320_v34, %v308_v52  ;;  %v301_v24 = vperm.slane %v1551_v60, 4  ;;  %v512_v25 = vmul.f32 %v510_v7, %v484_v15  ;;  %v462_v32 = vperm.slane %v1582_v31, 7 }
  0xd8   : > { %761 = vmatpush.msra.mxu1 %v499_v37  ;;  %803 = vmatpush.msra.mxu3 %v348_v39  ;;  %v475_v33 = vperm.slane %v1535_v42, 1  ;;  %v292_v34 = vmul.f32 %v290_v18, %v1442_v0  ;;  %v506_v39 = vmul.f32 %v504_v35, %v484_v15  ;;  %v500_v41 = vmul.f32 %v498_v8, %v484_v15 }
  0xd9   : > { %789 = vmatpush.msra.mxu2 %v569_v43  ;;  %v295_v43 = vperm.slane %v1551_v60, 3  ;;  %v303_v44 = vmul.f32 %v301_v24, %v1444_v1  ;;  %v494_v52 = vmul.f32 %v492_v22, %v484_v15  ;;  %v463_v42 = vperm.slane %v1601_v57, 7 }
  0xda   : > { %762 = vmatpush.msra.mxu1 %v493_v9  ;;  %804 = vmatpush.msra.mxu3 %v342_v46  ;;  %v456_v9 = vperm.slane %v1582_v31, 6  ;;  %v286_v46 = vmul.f32 %v284_v47, %v1442_v0  ;;  %v457_v35 = vperm.slane %v1601_v57, 6  ;;  %v434_v24 = vperm.slane %v1601_v57, 4 }
  0xdb   : > { %790 = vmatpush.msra.mxu2 %v552_v49  ;;  %v297_v61 = vmul.f32 %v295_v43, %v1444_v1  ;;  %v415_v47 = vperm.slane %v1582_v31, 1 }
  0xdc   : > { %v313_v62 = vpop.permute.xlu0 %312  ;;  %763 = vmatpush.msra.mxu1 %v487_v53  ;;  %805 = vmatpush.msra.mxu3 %v336_v54  ;;  %v1554_v63 = vpop.permute.xlu1 %437 }
  0xdd   : > { %v319_v5 = vsel %vm318_vm6, %v313_v62, %v315_v29  ;;  %791 = vmatpush.msra.mxu2 %v546_v59  ;;  %v307_v29 = vperm.slane %v1551_v60, 5  ;;  %v1598_v53 = vsel %vm441_vm8, %v1554_v63, %v440_v48  ;;  %v280_v59 = vmul.f32 %v278_v36, %v1442_v0  ;;  %v639_v48 = vld [vmem:[#allocation8 + $0x8] sm:$0xff] }
  0xde   : > { %806 = vmatpush.msra.mxu3 %v330_v2  ;;  %v347_v12 = vmul.f32 %v345_v55, %v319_v5  ;;  %v341_v20 = vmul.f32 %v339_v4, %v319_v5  ;;  %v335_v26 = vmul.f32 %v333_v14, %v319_v5  ;;  %v329_v40 = vmul.f32 %v327_v21, %v319_v5  ;;  %v638_v14 = vld [vmem:[#allocation8] sm:$0xff] }
  0xdf   : > { %792 = vmatpush.msra.mxu2 %v540_v6  ;;  %v323_v27 = vmul.f32 %v319_v5, %v307_v29  ;;  %v450_v55 = vperm.slane %v1582_v31, 5  ;;  %v283_v62 = vperm.slane %v1551_v60, 1  ;;  %v433_v4 = vperm.slane %v1582_v31, 4  ;;  %v1612_v6 = vld [vmem:[#allocation6 + $0x58] sm:$0x1f] }
  0xe0   : > { %743 = vmatpush.msra.mxu0 %v347_v12  ;;  %807 = vmatpush.msra.mxu3 %v324_v16  ;;  %v471_v7 = vmul.f32 %v469_v50, %v1598_v53  ;;  %v291_v0 = vmul.f32 %v289_v51, %v1444_v1  ;;  %v277_v5 = vperm.slane %v1551_v60, 0  ;;  %v427_v16 = vperm.slane %v1582_v31, 3 }
  0xe1   : > { %817 = vmatpush.msrb.mxu2 %v535_v11  ;;  %v465_v11 = vmul.f32 %v463_v42, %v1598_v53  ;;  %v285_v12 = vmul.f32 %v283_v62, %v1444_v1  ;;  %v459_v18 = vmul.f32 %v457_v35, %v1598_v53  ;;  %v421_v21 = vperm.slane %v1582_v31, 2  ;;  %v731_v35 = vld [vmem:[#allocation9] sm:$0xff] }
  0xe2   : > { %987 = vmatmul.msk.f32.vlgmr.msra.gmra.mxu2 %vm733_vm7, %v1565_v23  ;;  %744 = vmatpush.msra.mxu0 %v341_v20  ;;  %v451_v20 = vperm.slane %v1601_v57, 5  ;;  %v627_v22 = vperm.slane %v1612_v6, 3  ;;  %v422_v36 = vperm.slane %v1601_v57, 2  ;;  %v410_v50 = vperm.slane %v1601_v57, 0 }
  0xe3   : > { %818 = vmatpush.msrb.mxu2 %v529_v19  ;;  %808 = vmatpush.msra.mxu3 %v304_v3  ;;  %v633_v3 = vperm.slane %v1612_v6, 4  ;;  %v279_v19 = vmul.f32 %v277_v5, %v1444_v1  ;;  %v423_v29 = vmul.f32 %v421_v21, %v1488_v38 }
  0xe4   : > { %745 = vmatpush.msra.mxu0 %v335_v26  ;;  %v436_v37 = vpop.permute.xlu1 %435  ;;  %v604_v8 = vpop.permute.xlu0 %603  ;;  %v453_v1 = vmul.f32 %v451_v20, %v1598_v53  ;;  %v428_v26 = vperm.slane %v1601_v57, 3 }
  0xe5   : > { %819 = vmatpush.msrb.mxu2 %v512_v25  ;;  %v442_v56 = vsel %vm441_vm8, %v436_v37, %v1554_v63  ;;  %809 = vmatpush.msra.mxu3 %v298_v28  ;;  %v488_v63 = vmul.f32 %v484_v15, %v475_v33  ;;  %v607_v60 = vsel %vm605_vm2, %v1467_v13, %v604_v8  ;;  %v621_v25 = vperm.slane %v1612_v6, 2  ;;  %v563_v37 = vpop.permute.xlu2 %562 }
  0xe6   : > { %746 = vmatpush.msra.mxu0 %v329_v40  ;;  %v470_v49 = vmul.f32 %v468_v30, %v442_v56  ;;  %v464_v54 = vmul.f32 %v462_v32, %v442_v56  ;;  %v458_v2 = vmul.f32 %v456_v9, %v442_v56  ;;  %v452_v10 = vmul.f32 %v450_v55, %v442_v56 }
  0xe7   : > { %820 = vmatpush.msrb.mxu2 %v506_v39  ;;  %810 = vmatpush.msra.mxu3 %v292_v34  ;;  %v446_v15 = vmul.f32 %v442_v56, %v433_v4  ;;  %v429_v13 = vmul.f32 %v427_v16, %v1488_v38  ;;  %v635_v28 = vmul.f32 %v633_v3, %v607_v60  ;;  %v409_v32 = vperm.slane %v1582_v31, 0  ;;  %v274_v56 = vld [vmem:[#allocation6 + $0x48] sm:$0xff] }
  0xe8   : > { %747 = vmatpush.msra.mxu0 %v323_v27  ;;  %764 = vmatpush.msra.mxu1 %v470_v49  ;;  %v629_v30 = vmul.f32 %v627_v22, %v607_v60  ;;  %v615_v33 = vperm.slane %v1612_v6, 1  ;;  %v447_v34 = vmul.f32 %v1598_v53, %v434_v24  ;;  %v417_v39 = vmul.f32 %v415_v47, %v1488_v38 }
  0xe9   : > { %821 = vmatpush.msrb.mxu2 %v500_v41  ;;  %811 = vmatpush.msra.mxu3 %v286_v46  ;;  %v623_v40 = vmul.f32 %v621_v25, %v607_v60  ;;  %v598_v41 = vperm.slane %v1612_v6, 0  ;;  %v430_v43 = vmul.f32 %v428_v26, %v1472_v17  ;;  %v416_v31 = vperm.slane %v1601_v57, 1 }
  0xea   : > { %748 = vmatpush.msra.mxu0 %v303_v44  ;;  %765 = vmatpush.msra.mxu1 %v464_v54  ;;  %v411_v44 = vmul.f32 %v409_v32, %v1488_v38  ;;  %v617_v9 = vmul.f32 %v615_v33, %v607_v60  ;;  %v592_v46 = vperm.slane %v274_v56, 7  ;;  %v566_v27 = vsel %vm564_vm3, %v1493_v45, %v563_v37 }
  0xeb   : > { %822 = vmatpush.msrb.mxu2 %v494_v52  ;;  %812 = vmatpush.msra.mxu3 %v280_v59  ;;  %v424_v49 = vmul.f32 %v422_v36, %v1472_v17  ;;  %v611_v51 = vmul.f32 %v607_v60, %v598_v41  ;;  %v586_v53 = vperm.slane %v274_v56, 6  ;;  %v418_v54 = vmul.f32 %v416_v31, %v1472_v17 }
  0xec   : > { %749 = vmatpush.msra.mxu0 %v297_v61  ;;  %766 = vmatpush.msra.mxu1 %v458_v2  ;;  %v594_v38 = vmul.f32 %v592_v46, %v566_v27  ;;  %v580_v55 = vperm.slane %v274_v56, 5  ;;  %v412_v59 = vmul.f32 %v410_v50, %v1472_v17  ;;  %v574_v52 = vperm.slane %v274_v56, 4 }
  0xed   : > { %823 = vmatpush.msrb.mxu2 %v488_v63  ;;  %813 = vmatmul.f32.vlgmr.msra.gmra.mxu3 %v638_v14  ;;  %v588_v45 = vmul.f32 %v586_v53, %v566_v27  ;;  %v557_v61 = vperm.slane %v274_v56, 3  ;;  %v551_v62 = vperm.slane %v274_v56, 2  ;;  %v545_v2 = vperm.slane %v274_v56, 1 }
  0xee   : > { %750 = vmatpush.msra.mxu0 %v291_v0  ;;  %767 = vmatpush.msra.mxu1 %v452_v10  ;;  %v582_v57 = vmul.f32 %v580_v55, %v566_v27  ;;  %v576_v42 = vmul.f32 %v574_v52, %v566_v27 }
  0xef   : > { %824 = vmatpush.msrb.mxu2 %v471_v7  ;;  %v570_v63 = vmul.f32 %v566_v27, %v557_v61  ;;  %v553_v4 = vmul.f32 %v551_v62, %v1547_v58  ;;  %v539_v7 = vperm.slane %v274_v56, 0  ;;  %v547_v17 = vmul.f32 %v545_v2, %v1547_v58 }
  0xf0   : > { %751 = vmatpush.msra.mxu0 %v285_v12  ;;  %768 = vmatpush.msra.mxu1 %v446_v15 }
  0xf1   : > { %825 = vmatpush.msrb.mxu2 %v465_v11  ;;  %v541_v0 = vmul.f32 %v539_v7, %v1547_v58 }
  0xf2   : > { %752 = vmatpush.msra.mxu0 %v279_v19  ;;  %769 = vmatpush.msra.mxu1 %v429_v13 }
  0xf3   : > { %826 = vmatpush.msrb.mxu2 %v459_v18  ;;  %753 = vmatmul.f32.vlgmr.msra.gmra.mxu0 %v638_v14  ;;  %v732_v14 = vld [vmem:[#allocation9 + $0x8] sm:$0xff] }
  0xf4   : > { %840 = vmatpush.msrb.mxu0 %v635_v28  ;;  %770 = vmatpush.msra.mxu1 %v423_v29 }
  0xf5   : > { %827 = vmatpush.msrb.mxu2 %v453_v1 }
  0xf6   : > { %841 = vmatpush.msrb.mxu0 %v629_v30  ;;  %771 = vmatpush.msra.mxu1 %v417_v39 }
  0xf7   : > { %828 = vmatpush.msrb.mxu2 %v447_v34 }
  0xf8   : > { %842 = vmatpush.msrb.mxu0 %v623_v40  ;;  %772 = vmatpush.msra.mxu1 %v411_v44 }
  0xf9   : > { %829 = vmatpush.msrb.mxu2 %v430_v43  ;;  %773 = vmatmul.f32.vlgmr.msra.gmra.mxu1 %v639_v48 }
  0xfa   : > { %843 = vmatpush.msrb.mxu0 %v617_v9 }
  0xfb   : > { %830 = vmatpush.msrb.mxu2 %v424_v49 }
  0xfc   : > { %844 = vmatpush.msrb.mxu0 %v611_v51 }
  0xfd   : > { %831 = vmatpush.msrb.mxu2 %v418_v54 }
  0xfe   : > { %845 = vmatpush.msrb.mxu0 %v594_v38 }
  0xff   : > { %832 = vmatpush.msrb.mxu2 %v412_v59 }
 0x100   : > { %846 = vmatpush.msrb.mxu0 %v588_v45  ;;  %833 = vmatmul.f32.vlgmr.msrb.gmra.mxu2 %v639_v48 }
 0x102   : > { %847 = vmatpush.msrb.mxu0 %v582_v57 }
 0x104   : > { %848 = vmatpush.msrb.mxu0 %v576_v42 }
 0x106   : > { %849 = vmatpush.msrb.mxu0 %v570_v63 }
 0x108   : > { %850 = vmatpush.msrb.mxu0 %v553_v4 }
 0x10a   : > { %851 = vmatpush.msrb.mxu0 %v547_v17 }
 0x10c   : > { %852 = vmatpush.msrb.mxu0 %v541_v0 }
 0x10d   : > { %988 = vmatmul.msk.f32.vlgmr.msrb.gmra.mxu0 %vm733_vm7, %v1565_v23 }
 0x165   : > { %v794_v10 = vpop.f32.mrf.mxu2 }
 0x170   : > { %v754_v5 = vpop.f32.mrf.mxu0  ;;  %v814_v15 = vpop.f32.mrf.mxu3 }
 0x171   : > { %v755_v6 = vadd.f32 %v754_v5, %v731_v35  ;;  %v815_v16 = vadd.f32 %v814_v15, %v732_v14 }
 0x176   : > { %v774_v8 = vpop.f32.mrf.mxu1 }
 0x177   : > { %v775_v11 = vadd.f32 %v774_v8, %v755_v6 }
 0x179   : > { %v795_v12 = vadd.f32 %v794_v10, %v775_v11 }
 0x17b   : > { %857 = vst [vmem:[%s261_s13] sm:$0xff] %v795_v12 }
 0x183   : > { %v834_v58 = vpop.f32.mrf.mxu2 }
 0x184   : > { %v835_v23 = vadd.f32 %v834_v58, %v815_v16 }
 0x18a   : > { %v854_v3 = vpop.f32.mrf.mxu0 }
 0x18b   : > { %v855_v60 = vadd.f32 %v854_v3, %v835_v23 }
 0x18d   : > { %858 = vst [vmem:[%s261_s13 + $0x8] sm:$0xff] %v855_v60 }
 0x18e   : > { %1232 = shalt.err (!%p1229_p9)
}
 0x18f   : > { %1012 = dma.vmem_to_hbm [thread:$0]  (%p1395_p0), %s874_s28, 256, %s876_s6, %s860_s7  }
 0x190 PF: > { %s887_s26 = sand.u32 1, %s1267_s15   ;;  %p1699_p10 = scmp.ge.s32.totalorder %s1279_s18, 2 }
 0x191   : > { %s888_s10 = scalar_lea.sflag [#allocation5], %s887_s26 }
 0x192   : > { %p1029_p11 = pnand %p1699_p10, %p1401_p6 }
 0x194   : > { %p1030_p12 = pneg %p1029_p11 }
 0x196   : > { %1262 = dma.done.wait (%p1030_p12), %s888_s10, 256  }
 0x197   : > { %1264 = vsyncadd (%p1030_p12), %s888_s10, 4294967040  ;;  %p19_p2 = scmp.ge.s32.totalorder %s1375_s14, 4   ;;  %s1700_s15 = smov %s1271_s16 }
 0x198   : > { %s1701_s16 = smov %s1275_s17  ;;  %s1702_s17 = smov %s1387_s21 }
 0x199   : > { %s1703_s18 = smov %s1375_s14  ;;  %21 = sbr.rel (!%p19_p2) target bundleno = 9 (0x9), region = 93 }
 0x19e   :  { %894 = vsyncpa [#allocation4], 1 }
 0x19f   :  { %896 = vsyncpa [#allocation4 + $0x1], 1 }
 0x1a0   :  { %897 = vsyncpa [#allocation7], 1 }
 0x1a1   :  { %898 = vsyncpa [#allocation10], 1 }
 0x1a2   :  { %899 = vsyncpa [#allocation5], 1 }
 0x1a3   :  { %901 = vsyncpa [#allocation5 + $0x1], 1 }

</bundles_post_ra>
